<compile_context>
chip_gen: v7x
topology: tpu7x:2x2x1
jax: 0.10.0
libtpu: 0.0.40
codegen_flags: <defaults>
</compile_context>

<pallas_src>
import functools

import jax
import jax.numpy as jnp
from jax.experimental import pallas as pl
from jax.experimental.pallas import tpu as pltpu


def _round_up(x, m):
    return ((x + m - 1) // m) * m


def _actor_kernel(obs_ref, w1_ref, b1_ref, w2_ref, b2_ref, w3_ref, b3_ref,
                  out_ref, *, act_limit, act_dim, pack):
    """Fused MLP actor on one batch tile.

    (Linear+ReLU) x2 -> Linear -> tanh -> scale [-> pack rows into lanes].
    Matmul operands may be bf16 (MXU-friendly); accumulation, bias add, ReLU,
    tanh and the act_limit scale stay in f32 (friendly to v5e's VPU/EUP).
    """
    # In-kernel cast of the f32 obs tile to the weight compute dtype (no-op
    # for f32 weights); avoids a separate wrapper-side HBM cast pass.
    x = obs_ref[...].astype(w1_ref.dtype)

    # Layer 1: Linear + ReLU (f32 accumulate).
    h = jnp.dot(x, w1_ref[...], preferred_element_type=jnp.float32) + b1_ref[...]
    h = jnp.maximum(h, 0.0)

    # Layer 2: Linear + ReLU.
    h = jnp.dot(h.astype(w2_ref.dtype), w2_ref[...],
                preferred_element_type=jnp.float32) + b2_ref[...]
    h = jnp.maximum(h, 0.0)

    # Output layer (lane-tiled/padded to 128 lanes): Linear + Tanh + scale.
    y = jnp.dot(h.astype(w3_ref.dtype), w3_ref[...],
                preferred_element_type=jnp.float32) + b3_ref[...]
    y = act_limit * jnp.tanh(y)                       # (block_b, lanes), f32

    if pack > 1:
        # w3/b3 are lane-tiled, so lane l (< pack*act_dim) of row r holds
        # output feature l % act_dim of batch row r.  Pack `pack` consecutive
        # batch rows into one 128-lane output row:
        #   packed[i, j*act_dim + c] = y[i*pack + j, c]
        # Implemented with plain 2-D iota/compare masks plus a tiny 0/1
        # group-sum matmul (all guaranteed-lowerable ops; no odd reshapes).
        block_rows, lanes = y.shape
        nrows = block_rows // pack
        r_iota = jax.lax.broadcasted_iota(jnp.int32, (block_rows, lanes), 0)
        l_iota = jax.lax.broadcasted_iota(jnp.int32, (block_rows, lanes), 1)
        keep = (l_iota // act_dim == r_iota % pack).astype(jnp.float32)
        o_iota = jax.lax.broadcasted_iota(jnp.int32, (nrows, block_rows), 0)
        c_iota = jax.lax.broadcasted_iota(jnp.int32, (nrows, block_rows), 1)
        group_sum = (c_iota // pack == o_iota).astype(jnp.float32)
        packed = jnp.dot(group_sum, y * keep, preferred_element_type=jnp.float32)
        out_ref[...] = packed.astype(out_ref.dtype)
    else:
        out_ref[...] = y.astype(out_ref.dtype)


def prepare_actor_params(params, compute_dtype=jnp.float32):
    """One-time weight preparation (call once, NOT per forward).

    * Casts w1/w2/w3 to `compute_dtype` (MXU operand dtype); biases stay f32.
    * Lane-tiles the output layer: if act_dim <= 64, w3/b3 are repeated
      128 // act_dim times along the output axis (and zero-padded to 128
      lanes) so the kernel can pack several batch rows per output row.
      Otherwise they are just zero-padded to a multiple of 128 lanes.

    Returns a dict with kernel-ready arrays plus static Python ints
    'act_dim' / 'pack' (keep these static if you jit over the structure).
    """
    act_dim = int(params["w3"].shape[1])
    pack = 128 // act_dim if act_dim <= 64 else 1
    lanes = _round_up(max(act_dim * pack, 128), 128)
    w3 = params["w3"]
    b3 = params["b3"]
    if pack > 1:
        w3 = jnp.tile(w3, (1, pack))
        b3 = jnp.tile(b3, (1, pack))
    w3 = jnp.pad(w3, ((0, 0), (0, lanes - act_dim * pack)))
    b3 = jnp.pad(b3, ((0, 0), (0, lanes - act_dim * pack)))
    return {
        "w1": params["w1"].astype(compute_dtype),
        "b1": params["b1"].astype(jnp.float32),
        "w2": params["w2"].astype(compute_dtype),
        "b2": params["b2"].astype(jnp.float32),
        "w3": w3.astype(compute_dtype),
        "b3": b3.astype(jnp.float32),
        "act_dim": act_dim,
        "pack": pack,
    }


def mlp_actor_forward(obs, prepared, act_limit, *, block_b=None,
                      pack_output=True):
    """Batch-tiled Pallas forward pass.

    obs:         (B, obs_dim) float32.
    prepared:    output of prepare_actor_params (weights pre-cast/pre-tiled).
    block_b:     batch tile size; default targets >= 2 grid steps (both v7x
                 TensorCores busy) and caps the tile at 2048 rows.
    pack_output: pack 128 // act_dim batch rows per 128-lane output row so
                 only real bytes are written back (needs a big enough tile).
    """
    B, obs_dim = obs.shape
    w1, b1 = prepared["w1"], prepared["b1"]
    w2, b2 = prepared["w2"], prepared["b2"]
    w3, b3 = prepared["w3"], prepared["b3"]
    act_dim = prepared["act_dim"]
    pack = prepared["pack"]
    h1 = w1.shape[1]
    h2 = w2.shape[1]
    lanes = w3.shape[1]

    # --- Batch tile: >= 2 grid steps when possible (v7x megacore), otherwise
    #     as large as reasonable (per-grid-step overhead ~0.35us dominates the
    #     tiny matmuls), capped so VMEM stays modest on v7x (64 MiB physical).
    if block_b is None:
        block_b = min(2048, max(8, _round_up(pl.cdiv(B, 2), 8)))
    block_b = _round_up(block_b, 8)

    # Output packing needs whole groups of `pack` rows per output sublane row.
    align = 8 * pack
    use_pack = bool(pack_output) and pack > 1 and block_b >= align
    if use_pack:
        block_b = (block_b // align) * align          # floor-align -> less padding

    b_padded = _round_up(B, block_b)
    if b_padded != B:
        # TODO(synk): rely on Pallas non-divisible-grid store masking to avoid
        # this extra HBM pass over obs for ragged batch sizes.
        obs = jnp.pad(obs, ((0, b_padded - B), (0, 0)))
    grid = (b_padded // block_b,)

    # Weights/biases: constant index_map -> DMA'd once, VMEM-resident.
    def resident(arr):
        return pl.BlockSpec(arr.shape, lambda i: (0, 0))

    in_specs = [
        pl.BlockSpec((block_b, obs_dim), lambda i: (i, 0)),   # obs tile
        resident(w1), resident(b1),
        resident(w2), resident(b2),
        resident(w3), resident(b3),
    ]
    if use_pack:
        out_block = (block_b // pack, lanes)
        out_rows = b_padded // pack
    else:
        out_block = (block_b, lanes)
        out_rows = b_padded
    out_specs = pl.BlockSpec(out_block, lambda i: (i, 0))

    # Advisory cost estimate so XLA schedules the custom call sensibly.
    weight_bytes = sum(int(a.size) * a.dtype.itemsize
                       for a in (w1, b1, w2, b2, w3, b3))
    cost = pl.CostEstimate(
        flops=2 * b_padded * (obs_dim * h1 + h1 * h2 + h2 * lanes),
        transcendentals=b_padded * act_dim,            # honest tanh count
        bytes_accessed=int(obs.size) * obs.dtype.itemsize + weight_bytes
                       + out_rows * lanes * 4,
    )

    # VMEM budget: double-buffered obs/out tiles + resident weights + f32
    # intermediates.  Only raise the scoped limit when the estimate needs it
    # (v5e default 16 MiB, v6e/v7x 32 MiB scoped; v7x physical is 64 MiB).
    vmem_bytes = (2 * block_b * obs_dim * obs.dtype.itemsize
                  + 2 * out_block[0] * lanes * 4
                  + 2 * weight_bytes
                  + 2 * block_b * (h1 + h2 + lanes) * 4)
    if vmem_bytes > (14 << 20):
        compiler_params = pltpu.CompilerParams(
            dimension_semantics=("parallel",),
            vmem_limit_bytes=int(min(_round_up(vmem_bytes + (4 << 20), 1 << 20),
                                     40 << 20)))
    else:
        compiler_params = pltpu.CompilerParams(
            dimension_semantics=("parallel",))

    kernel = functools.partial(_actor_kernel, act_limit=float(act_limit),
                               act_dim=act_dim, pack=pack if use_pack else 1)

    out = pl.pallas_call(
        kernel,
        out_shape=jax.ShapeDtypeStruct((out_rows, lanes), jnp.float32),
        grid=grid,
        in_specs=in_specs,
        out_specs=out_specs,
        compiler_params=compiler_params,
        cost_estimate=cost,
    )(obs, w1, b1, w2, b2, w3, b3)

    if use_pack:
        out = out[:, :pack * act_dim].reshape(b_padded, act_dim)
        return out[:B]
    return out[:B, :act_dim]


def init_params(key, obs_dim, hidden_sizes, act_dim):
    """Deterministic synthetic init (PyTorch-Linear-like uniform fan_in bound)."""
    sizes = [obs_dim] + list(hidden_sizes) + [act_dim]
    params = {}
    for j in range(len(sizes) - 1):
        fan_in, fan_out = sizes[j], sizes[j + 1]
        key, kw, kb = jax.random.split(key, 3)
        bound = 1.0 / jnp.sqrt(jnp.float32(fan_in))
        params[f"w{j + 1}"] = jax.random.uniform(
            kw, (fan_in, fan_out), jnp.float32, -bound, bound)
        params[f"b{j + 1}"] = jax.random.uniform(
            kb, (1, fan_out), jnp.float32, -bound, bound)
    return params


def reference_forward(obs, params, act_limit):
    """Pure-JAX reference (mirrors PyTorch MLPActor.forward with ReLU act)."""
    h = jnp.maximum(obs @ params["w1"] + params["b1"], 0.0)
    h = jnp.maximum(h @ params["w2"] + params["b2"], 0.0)
    y = jnp.tanh(h @ params["w3"] + params["b3"])
    return act_limit * y


if __name__ == "__main__":
    key = jax.random.PRNGKey(0)

    # Small shapes consistent with the module's forward.
    batch = 8
    obs_dim = 16
    hidden_sizes = [32, 32]
    act_dim = 4
    act_limit = 2.0

    key, k_obs = jax.random.split(key)
    obs = jax.random.normal(k_obs, (batch, obs_dim), jnp.float32)
    params = init_params(key, obs_dim, hidden_sizes, act_dim)

    # One-time weight preparation (f32 parity variant + bf16 compute variant).
    prep_f32 = prepare_actor_params(params, jnp.float32)
    prep_bf16 = prepare_actor_params(params, jnp.bfloat16)

    # 1) Small batch, full f32, single grid step, unpacked output path.
    out = jax.block_until_ready(mlp_actor_forward(obs, prep_f32, act_limit))
    ref = reference_forward(obs, params, act_limit)
    assert out.shape == (batch, act_dim), out.shape
    assert jnp.allclose(out, ref, atol=1e-5, rtol=1e-5), (
        float(jnp.max(jnp.abs(out - ref))))

    # 2) Larger batch, f32, default tiling -> 2 grid steps + packed (byte-dense)
    #    output path; tight tolerance against the reference.
    key, k_big = jax.random.split(key)
    big_batch = 512
    obs_big = jax.random.normal(k_big, (big_batch, obs_dim), jnp.float32)
    ref_big = reference_forward(obs_big, params, act_limit)

    out_big = jax.block_until_ready(
        mlp_actor_forward(obs_big, prep_f32, act_limit))
    assert out_big.shape == (big_batch, act_dim), out_big.shape
    assert jnp.allclose(out_big, ref_big, atol=1e-5, rtol=1e-5), (
        float(jnp.max(jnp.abs(out_big - ref_big))))

    # 3) Same batch, f32, smaller tile -> 4 grid steps, unpacked path.
    out_small_tile = jax.block_until_ready(
        mlp_actor_forward(obs_big, prep_f32, act_limit, block_b=128))
    assert out_small_tile.shape == (big_batch, act_dim), out_small_tile.shape
    assert jnp.allclose(out_small_tile, ref_big, atol=1e-5, rtol=1e-5), (
        float(jnp.max(jnp.abs(out_small_tile - ref_big))))

    # 4) bf16 MXU operands (f32 accumulate/activations, in-kernel obs cast),
    #    packed output; compare loosely against the f32 reference.
    out_bf16 = jax.block_until_ready(
        mlp_actor_forward(obs_big, prep_bf16, act_limit))
    assert out_bf16.shape == (big_batch, act_dim), out_bf16.shape
    assert float(jnp.max(jnp.abs(out_bf16 - ref_big))) < 5e-2 * act_limit, (
        float(jnp.max(jnp.abs(out_bf16 - ref_big))))

    print("KERNEL_OK")
</pallas_src>

<mosaic_0001>
module attributes {stable_mosaic.version = 11 : i64} {
  func.func @_actor_kernel(%arg0: i32, %arg1: memref<8x16xf32, #tpu.memory_space<vmem>>, %arg2: memref<16x32xf32, #tpu.memory_space<vmem>>, %arg3: memref<1x32xf32, #tpu.memory_space<vmem>>, %arg4: memref<32x32xf32, #tpu.memory_space<vmem>>, %arg5: memref<1x32xf32, #tpu.memory_space<vmem>>, %arg6: memref<32x128xf32, #tpu.memory_space<vmem>>, %arg7: memref<1x128xf32, #tpu.memory_space<vmem>>, %arg8: memref<8x128xf32, #tpu.memory_space<vmem>>) attributes {dimension_semantics = [#tpu.dimension_semantics<parallel>], iteration_bounds = array<i64: 1>, scalar_prefetch = 0 : i64, scratch_operands = 0 : i64, tpu.core_type = #tpu.core_type<tc>, window_params = [{transform_indices = @transform_0, window_bounds = array<i64: 8, 16>}, {pipeline_mode = #tpu.pipeline_mode<synchronous>, transform_indices = @transform_1, window_bounds = array<i64: 16, 32>}, {pipeline_mode = #tpu.pipeline_mode<synchronous>, transform_indices = @transform_2, window_bounds = array<i64: 1, 32>}, {pipeline_mode = #tpu.pipeline_mode<synchronous>, transform_indices = @transform_3, window_bounds = array<i64: 32, 32>}, {pipeline_mode = #tpu.pipeline_mode<synchronous>, transform_indices = @transform_4, window_bounds = array<i64: 1, 32>}, {pipeline_mode = #tpu.pipeline_mode<synchronous>, transform_indices = @transform_5, window_bounds = array<i64: 32, 128>}, {pipeline_mode = #tpu.pipeline_mode<synchronous>, transform_indices = @transform_6, window_bounds = array<i64: 1, 128>}, {transform_indices = @transform_7, window_bounds = array<i64: 8, 128>}]} {
    %c0 = arith.constant 0 : index
    %c0_0 = arith.constant 0 : index
    %0 = vector.load %arg1[%c0, %c0_0] : memref<8x16xf32, #tpu.memory_space<vmem>>, vector<8x16xf32>
    %c0_1 = arith.constant 0 : index
    %c0_2 = arith.constant 0 : index
    %1 = vector.load %arg2[%c0_1, %c0_2] : memref<16x32xf32, #tpu.memory_space<vmem>>, vector<16x32xf32>
    %cst = arith.constant dense<0.000000e+00> : vector<8x32xf32>
    %2 = tpu.matmul %0, %1, %cst {dimension_numbers = #tpu.dot_dimension_numbers<[1], [0], [0], [1], [0, 0, 1, 1], [], []>} : vector<8x16xf32>, vector<16x32xf32>, vector<8x32xf32> -> vector<8x32xf32>
    %c0_3 = arith.constant 0 : index
    %c0_4 = arith.constant 0 : index
    %3 = vector.load %arg3[%c0_3, %c0_4] : memref<1x32xf32, #tpu.memory_space<vmem>>, vector<1x32xf32>
    %4 = vector.broadcast %3 : vector<1x32xf32> to vector<8x32xf32>
    %5 = arith.addf %2, %4 : vector<8x32xf32>
    %cst_5 = arith.constant 0.000000e+00 : f32
    %6 = vector.broadcast %cst_5 : f32 to vector<8x32xf32>
    %7 = arith.maximumf %5, %6 : vector<8x32xf32>
    %c0_6 = arith.constant 0 : index
    %c0_7 = arith.constant 0 : index
    %8 = vector.load %arg4[%c0_6, %c0_7] : memref<32x32xf32, #tpu.memory_space<vmem>>, vector<32x32xf32>
    %cst_8 = arith.constant dense<0.000000e+00> : vector<8x32xf32>
    %9 = tpu.matmul %7, %8, %cst_8 {dimension_numbers = #tpu.dot_dimension_numbers<[1], [0], [0], [1], [0, 0, 1, 1], [], []>} : vector<8x32xf32>, vector<32x32xf32>, vector<8x32xf32> -> vector<8x32xf32>
    %c0_9 = arith.constant 0 : index
    %c0_10 = arith.constant 0 : index
    %10 = vector.load %arg5[%c0_9, %c0_10] : memref<1x32xf32, #tpu.memory_space<vmem>>, vector<1x32xf32>
    %11 = vector.broadcast %10 : vector<1x32xf32> to vector<8x32xf32>
    %12 = arith.addf %9, %11 : vector<8x32xf32>
    %cst_11 = arith.constant 0.000000e+00 : f32
    %13 = vector.broadcast %cst_11 : f32 to vector<8x32xf32>
    %14 = arith.maximumf %12, %13 : vector<8x32xf32>
    %c0_12 = arith.constant 0 : index
    %c0_13 = arith.constant 0 : index
    %15 = vector.load %arg6[%c0_12, %c0_13] : memref<32x128xf32, #tpu.memory_space<vmem>>, vector<32x128xf32>
    %cst_14 = arith.constant dense<0.000000e+00> : vector<8x128xf32>
    %16 = tpu.matmul %14, %15, %cst_14 {dimension_numbers = #tpu.dot_dimension_numbers<[1], [0], [0], [1], [0, 0, 1, 1], [], []>} : vector<8x32xf32>, vector<32x128xf32>, vector<8x128xf32> -> vector<8x128xf32>
    %c0_15 = arith.constant 0 : index
    %c0_16 = arith.constant 0 : index
    %17 = vector.load %arg7[%c0_15, %c0_16] : memref<1x128xf32, #tpu.memory_space<vmem>>, vector<1x128xf32>
    %18 = vector.broadcast %17 : vector<1x128xf32> to vector<8x128xf32>
    %19 = arith.addf %16, %18 : vector<8x128xf32>
    %20 = math.tanh %19 : vector<8x128xf32>
    %cst_17 = arith.constant 2.000000e+00 : f32
    %21 = vector.broadcast %cst_17 : f32 to vector<8x128xf32>
    %22 = arith.mulf %21, %20 : vector<8x128xf32>
    %c0_18 = arith.constant 0 : index
    %c0_19 = arith.constant 0 : index
    %23 = vector.load %arg8[%c0_18, %c0_19] : memref<8x128xf32, #tpu.memory_space<vmem>>, vector<8x128xf32>
    tpu.vector_store %arg8[%c0_18, %c0_19], %22 {strides = array<i32>} : memref<8x128xf32, #tpu.memory_space<vmem>>, vector<8x128xf32>,
    return
  }
  func.func @transform_0(%arg0: i32) -> (i32, i32) {
    %c0_i32 = arith.constant 0 : i32
    %c0_i32_0 = arith.constant 0 : i32
    return %arg0, %c0_i32 : i32, i32
  }
  func.func @transform_1(%arg0: i32) -> (i32, i32) {
    %c0_i32 = arith.constant 0 : i32
    %c0_i32_0 = arith.constant 0 : i32
    %c0_i32_1 = arith.constant 0 : i32
    return %c0_i32, %c0_i32_0 : i32, i32
  }
  func.func @transform_2(%arg0: i32) -> (i32, i32) {
    %c0_i32 = arith.constant 0 : i32
    %c0_i32_0 = arith.constant 0 : i32
    %c0_i32_1 = arith.constant 0 : i32
    return %c0_i32, %c0_i32_0 : i32, i32
  }
  func.func @transform_3(%arg0: i32) -> (i32, i32) {
    %c0_i32 = arith.constant 0 : i32
    %c0_i32_0 = arith.constant 0 : i32
    %c0_i32_1 = arith.constant 0 : i32
    return %c0_i32, %c0_i32_0 : i32, i32
  }
  func.func @transform_4(%arg0: i32) -> (i32, i32) {
    %c0_i32 = arith.constant 0 : i32
    %c0_i32_0 = arith.constant 0 : i32
    %c0_i32_1 = arith.constant 0 : i32
    return %c0_i32, %c0_i32_0 : i32, i32
  }
  func.func @transform_5(%arg0: i32) -> (i32, i32) {
    %c0_i32 = arith.constant 0 : i32
    %c0_i32_0 = arith.constant 0 : i32
    %c0_i32_1 = arith.constant 0 : i32
    return %c0_i32, %c0_i32_0 : i32, i32
  }
  func.func @transform_6(%arg0: i32) -> (i32, i32) {
    %c0_i32 = arith.constant 0 : i32
    %c0_i32_0 = arith.constant 0 : i32
    %c0_i32_1 = arith.constant 0 : i32
    return %c0_i32, %c0_i32_0 : i32, i32
  }
  func.func @transform_7(%arg0: i32) -> (i32, i32) {
    %c0_i32 = arith.constant 0 : i32
    %c0_i32_0 = arith.constant 0 : i32
    return %arg0, %c0_i32 : i32, i32
  }
}

</mosaic_0001>

<bundles_post_ra>
// kernel: tpu_custom_call.1
= control target key start
LH: loop header
LB: loop body
LE: loop exit
PB: predicated region body
PF: predicated region fallthrough
CT: control target
= control target key end

     0   :  { %12 = vsyncpa [#allocation3], 0  ;;  %s679_s0 = inlined_call_operand.hbm [shape: f32[8,16], index: 0, kind: input, shape index: {}]   ;;  %s680_s1 = inlined_call_operand.hbm [shape: f32[16,32], index: 1, kind: input, shape index: {}]   ;;  %s681_s2 = inlined_call_operand.vmem [shape: f32[1,32], index: 2, kind: input, shape index: {}]   ;;  %s682_s3 = inlined_call_operand.hbm [shape: f32[32,32], index: 3, kind: input, shape index: {}]   ;;  %s683_s4 = inlined_call_operand.vmem [shape: f32[1,32], index: 4, kind: input, shape index: {}]   ;;  %s684_s5 = inlined_call_operand.hbm [shape: f32[32,128], index: 5, kind: input, shape index: {}]   ;;  %s685_s6 = inlined_call_operand.vmem [shape: f32[1,128], index: 6, kind: input, shape index: {}]   ;;  %s686_s7 = inlined_call_operand.hbm [shape: f32[8,128], index: 7, kind: output, shape index: {}]  }
   0x1   :  { %13 = vsyncpa [#allocation6], 0 }
   0x2   :  { %14 = vsyncpa [#allocation9], 0 }
   0x3   :  { %15 = vsyncpa [#allocation4], 0  ;;  %s548_s24 = smov [#allocation5]   ;;  %s430_s28 = scalar_lea.hbm %s680_s1, 256 }
   0x4   :  { %s31_s25 = sshll.u32 %s548_s24, 4  ;;  %p431_p0 = scmp.ne.s32.totalorder %s680_s1, %s430_s28  ;;  %s32_s25 = int_to_ptr.vmem [resolvable:$true] %s31_s25 }
   0x5   :  { %p434_p1 = scmp.lt.u32.totalorder %s430_s28, %s680_s1 }
   0x7   :  { %p436_p2 = pnand %p434_p1, %p431_p0 }
   0x9   :  { %439 = shalt.err (!%p436_p2)
}
   0xa   :  { %s440_s10 = scalar_lea.vmem %s32_s25, 256  ;;  %p445_p4 = scmp.lt.s32.totalorder %s32_s25, %s32_s25 }
   0xb   :  { %p441_p3 = scmp.ne.s32.totalorder %s32_s25, %s440_s10  ;;  %p446_p5 = scmp.lt.s32.totalorder %s440_s10, %s440_s10 }
   0xd   :  { %p447_p6 = por %p446_p5, %p445_p4 }
   0xf   :  { %p448_p7 = pnand %p447_p6, %p441_p3 }
  0x11   :  { %451 = shalt.err (!%p448_p7)
}
  0x12   :  { %s549_s11 = smov 128   ;;  %s550_s12 = smov 8  }
  0x13   :  { %37 = dma.hbm_to_vmem [thread:$0]  %s680_s1, 256, %s32_s25, [#allocation6], %s549_s11, %s549_s11, %s550_s12  }
  0x14   :  { %s551_s15 = smov [#allocation2]   ;;  %s552_s17 = smov [#allocation7]  }
  0x15   :  { %s22_s16 = sshll.u32 %s551_s15, 4  ;;  %s45_s18 = sshll.u32 %s552_s17, 4  ;;  %s23_s16 = int_to_ptr.vmem [resolvable:$true] %s22_s16  ;;  %s46_s18 = int_to_ptr.vmem [resolvable:$true] %s45_s18 }
  0x16   :  { %s452_s21 = scalar_lea.hbm %s679_s0, 128 }
  0x17   :  { %p453_p8 = scmp.ne.s32.totalorder %s679_s0, %s452_s21  ;;  %p456_p9 = scmp.lt.u32.totalorder %s452_s21, %s679_s0 }
  0x19   :  { %p458_p10 = pnand %p456_p9, %p453_p8 }
  0x1b   :  { %461 = shalt.err (!%p458_p10)
}
  0x1c   :  { %s462_s1 = scalar_lea.vmem %s23_s16, 128  ;;  %p467_p12 = scmp.lt.s32.totalorder %s23_s16, %s23_s16 }
  0x1d   :  { %p463_p11 = scmp.ne.s32.totalorder %s23_s16, %s462_s1  ;;  %p468_p13 = scmp.lt.s32.totalorder %s462_s1, %s462_s1 }
  0x1f   :  { %p469_p0 = por %p468_p13, %p467_p12 }
  0x21   :  { %p470_p1 = pnand %p469_p0, %p463_p11 }
  0x23   :  { %473 = shalt.err (!%p470_p1)
}
  0x24   :  { %25 = dma.hbm_to_vmem [thread:$0]  %s679_s0, 128, %s23_s16, [#allocation3]  }
  0x25   :  { %s474_s30 = scalar_lea.hbm %s682_s3, 512 }
  0x26   :  { %p475_p2 = scmp.ne.s32.totalorder %s682_s3, %s474_s30  ;;  %p478_p3 = scmp.lt.u32.totalorder %s474_s30, %s682_s3 }
  0x28   :  { %p480_p4 = pnand %p478_p3, %p475_p2 }
  0x2a   :  { %483 = shalt.err (!%p480_p4)
}
  0x2b   :  { %s484_s14 = scalar_lea.vmem %s46_s18, 512  ;;  %p489_p6 = scmp.lt.s32.totalorder %s46_s18, %s46_s18 }
  0x2c   :  { %p485_p5 = scmp.ne.s32.totalorder %s46_s18, %s484_s14  ;;  %p490_p7 = scmp.lt.s32.totalorder %s484_s14, %s484_s14 }
  0x2e   :  { %p491_p8 = por %p490_p7, %p489_p6 }
  0x30   :  { %p492_p9 = pnand %p491_p8, %p485_p5 }
  0x32   :  { %495 = shalt.err (!%p492_p9)
}
  0x33   :  { %51 = dma.hbm_to_vmem [thread:$0]  %s682_s3, 512, %s46_s18, [#allocation6], %s549_s11, %s549_s11, %s550_s12  }
  0x34   :  { %s553_s16 = smov [#allocation8]   ;;  %s496_s21 = scalar_lea.hbm %s684_s5, 512 }
  0x35   :  { %s59_s17 = sshll.u32 %s553_s16, 4  ;;  %p497_p10 = scmp.ne.s32.totalorder %s684_s5, %s496_s21  ;;  %s60_s17 = int_to_ptr.vmem [resolvable:$true] %s59_s17 }
  0x36   :  { %p500_p11 = scmp.lt.u32.totalorder %s496_s21, %s684_s5 }
  0x38   :  { %p502_p12 = pnand %p500_p11, %p497_p10 }
  0x3a   :  { %505 = shalt.err (!%p502_p12)
}
  0x3b   :  { %s506_s1 = scalar_lea.vmem %s60_s17, 512  ;;  %p511_p0 = scmp.lt.s32.totalorder %s60_s17, %s60_s17 }
  0x3c   :  { %p507_p13 = scmp.ne.s32.totalorder %s60_s17, %s506_s1  ;;  %p512_p1 = scmp.lt.s32.totalorder %s506_s1, %s506_s1 }
  0x3e   :  { %p513_p2 = por %p512_p1, %p511_p0 }
  0x40   :  { %p514_p3 = pnand %p513_p2, %p507_p13 }
  0x42   :  { %517 = shalt.err (!%p514_p3)
}
  0x43   :  { %65 = dma.hbm_to_vmem [thread:$0]  %s684_s5, 512, %s60_s17, [#allocation9], %s549_s11, %s549_s11, %s550_s12  }
  0x44   :  { %540 = dma.done.wait [#allocation3], 128  }
  0x45   :  { %541 = vsyncadd [#allocation3], 4294967168 }
  0x46   :  { %542 = dma.done.wait [#allocation6], 768  }
  0x47   :  { %543 = vsyncadd [#allocation6], 4294966528 }
  0x48   :  { %544 = dma.done.wait [#allocation9], 512  }
  0x49   :  { %545 = vsyncadd [#allocation9], 4294966784  ;;  %v554_v0 = vmov 0.0|0.0   ;;  %vm555_vm0 = vmmov 0   ;;  %v556_v1 = vmov 0.0   ;;  %v81_v2 = vld [vmem:[#allocation5] sm:$0xff] }
  0x4a   :  { %403 = vmatprep.subr.bf16.mxu0 %v554_v0  ;;  %378 = vmatprep.mubr.msk.f32.mxu0 %vm555_vm0, %v556_v1  ;;  %v82_v3 = vld [vmem:[#allocation5 + $0x8] sm:$0xff]  ;;  %v165_v5 = vld [vmem:[#allocation7] sm:$0xff]  ;;  %v166_v6 = vld [vmem:[#allocation7 + $0x8] sm:$0xff]  ;;  %vm90_vm1 = vcmask 130048   ;;  %vm176_vm2 = vcmask 261120   ;;  %s557_s28 = smov [#allocation10]  }
  0x4b   :  { %406 = vmatprep.subr.bf16.mxu1 %v554_v0  ;;  %389 = vmatprep.mubr.msk.f32.mxu1 %vm555_vm0, %v556_v1  ;;  %v404_v4 = vpack.c.bf16 %v82_v3, %v81_v2  ;;  %v407_v7 = vpack.c.bf16 %v166_v6, %v165_v5  ;;  %v80_v8 = vld [vmem:[#allocation2] sm:$0xff]  ;;  %v167_v9 = vld [vmem:[#allocation7 + $0x10] sm:$0xff]  ;;  %v168_v10 = vld [vmem:[#allocation7 + $0x18] sm:$0xff]  ;;  %s344_s29 = sshll.u32 %s557_s28, 4  ;;  %s345_s29 = int_to_ptr.vmem [resolvable:$true] %s344_s29 }
  0x4c   :  { %v410_v11 = vpack.c.bf16 %v168_v10, %v167_v9  ;;  %v251_v12 = vld [vmem:[#allocation8] sm:$0xff]  ;;  %v252_v13 = vld [vmem:[#allocation8 + $0x8] sm:$0xff]  ;;  %v253_v20 = vld [vmem:[#allocation8 + $0x10] sm:$0xff]  ;;  %p523_p5 = scmp.lt.s32.totalorder %s345_s29, %s345_s29 }
  0x4d   :  { %405 = vmatpush3.bf16.msra.mxu0 %v404_v4  ;;  %408 = vmatpush3.bf16.msra.mxu1 %v407_v7  ;;  %v413_v14 = vpack.c.bf16 %v252_v13, %v251_v12  ;;  %v355_v15 = vld [vmem:[%s681_s2] ss:$0 sm:$0xff]  ;;  %v254_v21 = vld [vmem:[#allocation8 + $0x18] sm:$0xff] }
  0x4e   :  { %412 = vmatprep.subr.bf16.mxu0 %v554_v0  ;;  %409 = vmatprep.subr.bf16.mxu1 %v554_v0  ;;  %v416_v22 = vpack.c.bf16 %v254_v21, %v253_v20  ;;  %v357_v23 = vld [vmem:[%s683_s4] ss:$0 sm:$0xff]  ;;  %s518_s4 = scalar_lea.vmem %s345_s29, 128 }
  0x4f   :  { %v359_v28 = vld [vmem:[%s685_s6] ss:$0 sm:$0xff]  ;;  %p519_p4 = scmp.ne.s32.totalorder %s345_s29, %s518_s4  ;;  %p524_p6 = scmp.lt.s32.totalorder %s518_s4, %s518_s4 }
  0x50   :  { %379 = vmatmul.mubr.msk.f32.vlgmr.msra.gmra.mrb[0].mxu0 %vm90_vm1, %v80_v8 }
  0x51   :  { %400 = vmatprep.mubr.msk.f32.mxu0 %vm555_vm0, %v556_v1  ;;  %411 = vmatpush3.bf16.msra.mxu1 %v410_v11  ;;  %p525_p7 = por %p524_p6, %p523_p5 }
  0x52   :  { %414 = vmatpush3.bf16.msra.mxu0 %v413_v14 }
  0x53   :  { %415 = vmatprep.subr.bf16.mxu0 %v554_v0  ;;  %p526_p8 = pnand %p525_p7, %p519_p4 }
  0x56   :  { %417 = vmatpush3.bf16.msra.mxu0 %v416_v22 }
 0x123   :  { %v160_v16 = vpop.f32.mrb[0].mxu0 }
 0x124   :  { %v161_v17 = vadd.f32 %v355_v15, %v160_v16  ;;  %v380_v18 = vpop.f32.mrb[1].mxu0 }
 0x126   :  { %v164_v19 = vmax.f32 %v161_v17, 0.0 }
 0x128   :  { %390 = vmatmul.mubr.msk.f32.vlgmr.msra.gmra.mrb[0].mxu1 %vm176_vm2, %v164_v19 }
 0x1fb   :  { %v246_v24 = vpop.f32.mrb[0].mxu1 }
 0x1fc   :  { %v247_v25 = vadd.f32 %v357_v23, %v246_v24  ;;  %v391_v26 = vpop.f32.mrb[1].mxu1 }
 0x1fe   :  { %v250_v27 = vmax.f32 %v247_v25, 0.0 }
 0x200   :  { %401 = vmatmul.mubr.msk.f32.vlgmr.msra.gmra.mrb[2].mxu0 %vm176_vm2, %v250_v27 }
 0x2d3   :  { %v331_v29 = vpop.f32.mrb[2].mxu0 }
 0x2d4   :  { %v332_v30 = vadd.f32 %v359_v28, %v331_v29  ;;  %v402_v31 = vpop.f32.mrb[3].mxu0 }
 0x2d6   :  { %428 = vtanh.f32 %v332_v30 }
 0x2e0   :  { %v429_v32 = vpop.eup %428 }
 0x2e1   :  { %v336_v33 = vmul.f32 2.0, %v429_v32 }
 0x2e3   :  { %337 = vst [vmem:[#allocation10] sm:$0xff] %v336_v33 }
 0x2e4   :  { %529 = shalt.err (!%p526_p8)
}
 0x2e5   :  { %s530_s6 = scalar_lea.hbm %s686_s7, 128 }
 0x2e6   :  { %p531_p9 = scmp.ne.s32.totalorder %s686_s7, %s530_s6  ;;  %p534_p10 = scmp.lt.u32.totalorder %s530_s6, %s686_s7 }
 0x2e8   :  { %p536_p11 = pnand %p534_p10, %p531_p9 }
 0x2ea   :  { %539 = shalt.err (!%p536_p11)
}
 0x2eb   :  { %347 = dma.vmem_to_hbm [thread:$0]  %s345_s29, 128, %s686_s7, [#allocation4]  }
 0x2ec   :  { %546 = dma.done.wait [#allocation4], 128  }
 0x2ed   :  { %547 = vsyncadd [#allocation4], 4294967168 }
 0x2ee   :  { %351 = vsyncpa [#allocation3], 1 }
 0x2ef   :  { %352 = vsyncpa [#allocation6], 1 }
 0x2f0   :  { %353 = vsyncpa [#allocation9], 1 }
 0x2f1   :  { %354 = vsyncpa [#allocation4], 1 }

</bundles_post_ra>
